<compile_context>
chip_gen: v6e
topology: v6e:2x2x1
jax: 0.10.0
libtpu: 0.0.40
codegen_flags: <defaults>
</compile_context>

<pallas_src>
import jax
import jax.numpy as jnp
from jax.experimental import pallas as pl
from jax.experimental.pallas import tpu as pltpu

H1, H2, OUT_DIM = 64, 32, 10


def _round_up(x, m):
    return ((x + m - 1) // m) * m


def _sigmoid(x):
    # Exact 1 / (1 + exp(-x)); exp lands on the EUP (idle slot here), divide on VPU.
    return 1.0 / (1.0 + jnp.exp(-x))


def _mlp_kernel(x_ref, w1_ref, b1_ref, w2_ref, b2_ref, w3_ref, b3_ref, o_ref):
    # Layer 1: Linear(input_size, 64) + Sigmoid   (Dropout1d = identity, eval mode)
    h1 = jnp.dot(x_ref[...], w1_ref[...], preferred_element_type=jnp.float32)
    h1 = _sigmoid(h1 + b1_ref[...])
    # Layer 2: Linear(64, 32) + Sigmoid           (Dropout1d = identity, eval mode)
    h2 = jnp.dot(h1, w2_ref[...], preferred_element_type=jnp.float32)
    h2 = _sigmoid(h2 + b2_ref[...])
    # Layer 3: Linear(32, 10), no activation; lane-narrow (tb, 10) store.
    out = jnp.dot(h2, w3_ref[...], preferred_element_type=jnp.float32)
    o_ref[...] = (out + b3_ref[...]).astype(o_ref.dtype)


def _choose_tile(batch, tile_b):
    """Batch tile: multiple of 8 sublanes; >=2 grid steps for large batches (v7x)."""
    if batch <= 8:
        return batch                      # one tile == full array (legal block shape)
    tb = min(tile_b, _round_up(pl.cdiv(batch, 2), 8))
    return max(8, (tb // 8) * 8)


def feedforward_nn(x, params, tile_b=8192):
    """Fused forward pass of FeedForwardNN (inference / eval mode).

    x:      (batch, input_size) float32
    params: dict with w1 (in,64), b1 (1,64), w2 (64,32), b2 (1,32),
                      w3 (32,10), b3 (1,10)   (weights stored transposed vs torch).
    returns (batch, 10) float32
    """
    batch, in_features = x.shape
    tb = _choose_tile(batch, tile_b)
    grid = (pl.cdiv(batch, tb),)

    w1, b1 = params["w1"], params["b1"]
    w2, b2 = params["w2"], params["b2"]
    w3, b3 = params["w3"], params["b3"]

    def resident(shape):      # weight/bias blocks: same block every grid step
        return pl.BlockSpec(shape, lambda i: (0, 0))

    flops = 2 * batch * (in_features * H1 + H1 * H2 + H2 * OUT_DIM)
    transcendentals = batch * (H1 + H2)                      # one exp per sigmoid elem
    bytes_accessed = (batch * in_features * 4                # x (f32, read)
                      + batch * OUT_DIM * 4                  # output (f32, write)
                      + 4 * (w1.size + w2.size + w3.size
                             + b1.size + b2.size + b3.size))

    out = pl.pallas_call(
        _mlp_kernel,
        out_shape=jax.ShapeDtypeStruct((batch, OUT_DIM), jnp.float32),
        grid=grid,
        in_specs=[
            pl.BlockSpec((tb, in_features), lambda i: (i, 0)),   # x tiles stream
            resident(w1.shape), resident(b1.shape),
            resident(w2.shape), resident(b2.shape),
            resident(w3.shape), resident(b3.shape),
        ],
        out_specs=pl.BlockSpec((tb, OUT_DIM), lambda i: (i, 0)),
        compiler_params=pltpu.CompilerParams(
            dimension_semantics=("parallel",),     # shard batch tiles across TCs
            vmem_limit_bytes=32 * 1024 * 1024,
        ),
        cost_estimate=pl.CostEstimate(
            flops=flops,
            transcendentals=transcendentals,
            bytes_accessed=bytes_accessed,
        ),
    )(x, w1, b1, w2, b2, w3, b3)

    return out


def init_params(key, input_size):
    """Deterministic init matching nn.Linear shapes (weights stored transposed)."""
    k1, k2, k3, k4, k5, k6 = jax.random.split(key, 6)

    def lin_init(kw, kb, fan_in, fan_out):
        bound = 1.0 / jnp.sqrt(fan_in)
        w = jax.random.uniform(kw, (fan_in, fan_out), jnp.float32, -bound, bound)
        b = jax.random.uniform(kb, (1, fan_out), jnp.float32, -bound, bound)
        return w, b

    w1, b1 = lin_init(k1, k2, input_size, H1)
    w2, b2 = lin_init(k3, k4, H1, H2)
    w3, b3 = lin_init(k5, k6, H2, OUT_DIM)
    return dict(w1=w1, b1=b1, w2=w2, b2=b2, w3=w3, b3=b3)


if __name__ == "__main__":
    key = jax.random.PRNGKey(0)
    input_size = 16   # stand-in for X_train.shape[1]
    batch = 8

    kx, kp = jax.random.split(key)
    x = jax.random.normal(kx, (batch, input_size), dtype=jnp.float32)
    params = init_params(kp, input_size)

    out = feedforward_nn(x, params)
    out = jax.block_until_ready(out)
    assert out.shape == (batch, OUT_DIM) and out.dtype == jnp.float32

    # Pure-JAX f32 reference (eval mode: dropout is identity). Tolerance covers
    # TPU MXU default-precision matmul rounding on both sides.
    h1 = jax.nn.sigmoid(x @ params["w1"] + params["b1"])
    h2 = jax.nn.sigmoid(h1 @ params["w2"] + params["b2"])
    ref = h2 @ params["w3"] + params["b3"]
    assert jnp.allclose(out, ref, atol=2e-2, rtol=2e-2), (
        f"max abs err {jnp.max(jnp.abs(out - ref))}")

    print("KERNEL_OK")
</pallas_src>

<mosaic_0001>
module attributes {stable_mosaic.version = 11 : i64} {
  func.func @_mlp_kernel(%arg0: i32, %arg1: memref<8x16xf32, #tpu.memory_space<vmem>>, %arg2: memref<16x64xf32, #tpu.memory_space<vmem>>, %arg3: memref<1x64xf32, #tpu.memory_space<vmem>>, %arg4: memref<64x32xf32, #tpu.memory_space<vmem>>, %arg5: memref<1x32xf32, #tpu.memory_space<vmem>>, %arg6: memref<32x10xf32, #tpu.memory_space<vmem>>, %arg7: memref<1x10xf32, #tpu.memory_space<vmem>>, %arg8: memref<8x10xf32, #tpu.memory_space<vmem>>) attributes {dimension_semantics = [#tpu.dimension_semantics<parallel>], iteration_bounds = array<i64: 1>, scalar_prefetch = 0 : i64, scratch_operands = 0 : i64, tpu.core_type = #tpu.core_type<tc>, window_params = [{transform_indices = @transform_0, window_bounds = array<i64: 8, 16>}, {pipeline_mode = #tpu.pipeline_mode<synchronous>, transform_indices = @transform_1, window_bounds = array<i64: 16, 64>}, {pipeline_mode = #tpu.pipeline_mode<synchronous>, transform_indices = @transform_2, window_bounds = array<i64: 1, 64>}, {pipeline_mode = #tpu.pipeline_mode<synchronous>, transform_indices = @transform_3, window_bounds = array<i64: 64, 32>}, {pipeline_mode = #tpu.pipeline_mode<synchronous>, transform_indices = @transform_4, window_bounds = array<i64: 1, 32>}, {pipeline_mode = #tpu.pipeline_mode<synchronous>, transform_indices = @transform_5, window_bounds = array<i64: 32, 10>}, {pipeline_mode = #tpu.pipeline_mode<synchronous>, transform_indices = @transform_6, window_bounds = array<i64: 1, 10>}, {transform_indices = @transform_7, window_bounds = array<i64: 8, 10>}]} {
    %c0 = arith.constant 0 : index
    %c0_0 = arith.constant 0 : index
    %0 = vector.load %arg1[%c0, %c0_0] : memref<8x16xf32, #tpu.memory_space<vmem>>, vector<8x16xf32>
    %c0_1 = arith.constant 0 : index
    %c0_2 = arith.constant 0 : index
    %1 = vector.load %arg2[%c0_1, %c0_2] : memref<16x64xf32, #tpu.memory_space<vmem>>, vector<16x64xf32>
    %cst = arith.constant dense<0.000000e+00> : vector<8x64xf32>
    %2 = tpu.matmul %0, %1, %cst {dimension_numbers = #tpu.dot_dimension_numbers<[1], [0], [0], [1], [0, 0, 1, 1], [], []>} : vector<8x16xf32>, vector<16x64xf32>, vector<8x64xf32> -> vector<8x64xf32>
    %c0_3 = arith.constant 0 : index
    %c0_4 = arith.constant 0 : index
    %3 = vector.load %arg3[%c0_3, %c0_4] : memref<1x64xf32, #tpu.memory_space<vmem>>, vector<1x64xf32>
    %4 = vector.broadcast %3 : vector<1x64xf32> to vector<8x64xf32>
    %5 = arith.addf %2, %4 : vector<8x64xf32>
    %cst_5 = arith.constant 0.000000e+00 : f32
    %6 = vector.broadcast %cst_5 : f32 to vector<8x64xf32>
    %7 = arith.subf %6, %5 : vector<8x64xf32>
    %8 = math.exp %7 : vector<8x64xf32>
    %cst_6 = arith.constant 1.000000e+00 : f32
    %9 = vector.broadcast %cst_6 : f32 to vector<8x64xf32>
    %10 = arith.addf %9, %8 : vector<8x64xf32>
    %cst_7 = arith.constant 1.000000e+00 : f32
    %11 = vector.broadcast %cst_7 : f32 to vector<8x64xf32>
    %12 = arith.divf %11, %10 : vector<8x64xf32>
    %c0_8 = arith.constant 0 : index
    %c0_9 = arith.constant 0 : index
    %13 = vector.load %arg4[%c0_8, %c0_9] : memref<64x32xf32, #tpu.memory_space<vmem>>, vector<64x32xf32>
    %cst_10 = arith.constant dense<0.000000e+00> : vector<8x32xf32>
    %14 = tpu.matmul %12, %13, %cst_10 {dimension_numbers = #tpu.dot_dimension_numbers<[1], [0], [0], [1], [0, 0, 1, 1], [], []>} : vector<8x64xf32>, vector<64x32xf32>, vector<8x32xf32> -> vector<8x32xf32>
    %c0_11 = arith.constant 0 : index
    %c0_12 = arith.constant 0 : index
    %15 = vector.load %arg5[%c0_11, %c0_12] : memref<1x32xf32, #tpu.memory_space<vmem>>, vector<1x32xf32>
    %16 = vector.broadcast %15 : vector<1x32xf32> to vector<8x32xf32>
    %17 = arith.addf %14, %16 : vector<8x32xf32>
    %cst_13 = arith.constant 0.000000e+00 : f32
    %18 = vector.broadcast %cst_13 : f32 to vector<8x32xf32>
    %19 = arith.subf %18, %17 : vector<8x32xf32>
    %20 = math.exp %19 : vector<8x32xf32>
    %cst_14 = arith.constant 1.000000e+00 : f32
    %21 = vector.broadcast %cst_14 : f32 to vector<8x32xf32>
    %22 = arith.addf %21, %20 : vector<8x32xf32>
    %cst_15 = arith.constant 1.000000e+00 : f32
    %23 = vector.broadcast %cst_15 : f32 to vector<8x32xf32>
    %24 = arith.divf %23, %22 : vector<8x32xf32>
    %c0_16 = arith.constant 0 : index
    %c0_17 = arith.constant 0 : index
    %25 = vector.load %arg6[%c0_16, %c0_17] : memref<32x10xf32, #tpu.memory_space<vmem>>, vector<32x10xf32>
    %cst_18 = arith.constant dense<0.000000e+00> : vector<8x10xf32>
    %26 = tpu.matmul %24, %25, %cst_18 {dimension_numbers = #tpu.dot_dimension_numbers<[1], [0], [0], [1], [0, 0, 1, 1], [], []>} : vector<8x32xf32>, vector<32x10xf32>, vector<8x10xf32> -> vector<8x10xf32>
    %c0_19 = arith.constant 0 : index
    %c0_20 = arith.constant 0 : index
    %27 = vector.load %arg7[%c0_19, %c0_20] : memref<1x10xf32, #tpu.memory_space<vmem>>, vector<1x10xf32>
    %28 = vector.broadcast %27 : vector<1x10xf32> to vector<8x10xf32>
    %29 = arith.addf %26, %28 : vector<8x10xf32>
    %c0_21 = arith.constant 0 : index
    %c0_22 = arith.constant 0 : index
    %30 = vector.load %arg8[%c0_21, %c0_22] : memref<8x10xf32, #tpu.memory_space<vmem>>, vector<8x10xf32>
    tpu.vector_store %arg8[%c0_21, %c0_22], %29 {strides = array<i32>} : memref<8x10xf32, #tpu.memory_space<vmem>>, vector<8x10xf32>,
    return
  }
  func.func @transform_0(%arg0: i32) -> (i32, i32) {
    %c0_i32 = arith.constant 0 : i32
    %c0_i32_0 = arith.constant 0 : i32
    return %arg0, %c0_i32 : i32, i32
  }
  func.func @transform_1(%arg0: i32) -> (i32, i32) {
    %c0_i32 = arith.constant 0 : i32
    %c0_i32_0 = arith.constant 0 : i32
    %c0_i32_1 = arith.constant 0 : i32
    return %c0_i32, %c0_i32_0 : i32, i32
  }
  func.func @transform_2(%arg0: i32) -> (i32, i32) {
    %c0_i32 = arith.constant 0 : i32
    %c0_i32_0 = arith.constant 0 : i32
    %c0_i32_1 = arith.constant 0 : i32
    return %c0_i32, %c0_i32_0 : i32, i32
  }
  func.func @transform_3(%arg0: i32) -> (i32, i32) {
    %c0_i32 = arith.constant 0 : i32
    %c0_i32_0 = arith.constant 0 : i32
    %c0_i32_1 = arith.constant 0 : i32
    return %c0_i32, %c0_i32_0 : i32, i32
  }
  func.func @transform_4(%arg0: i32) -> (i32, i32) {
    %c0_i32 = arith.constant 0 : i32
    %c0_i32_0 = arith.constant 0 : i32
    %c0_i32_1 = arith.constant 0 : i32
    return %c0_i32, %c0_i32_0 : i32, i32
  }
  func.func @transform_5(%arg0: i32) -> (i32, i32) {
    %c0_i32 = arith.constant 0 : i32
    %c0_i32_0 = arith.constant 0 : i32
    %c0_i32_1 = arith.constant 0 : i32
    return %c0_i32, %c0_i32_0 : i32, i32
  }
  func.func @transform_6(%arg0: i32) -> (i32, i32) {
    %c0_i32 = arith.constant 0 : i32
    %c0_i32_0 = arith.constant 0 : i32
    %c0_i32_1 = arith.constant 0 : i32
    return %c0_i32, %c0_i32_0 : i32, i32
  }
  func.func @transform_7(%arg0: i32) -> (i32, i32) {
    %c0_i32 = arith.constant 0 : i32
    %c0_i32_0 = arith.constant 0 : i32
    return %arg0, %c0_i32 : i32, i32
  }
}

</mosaic_0001>

<bundles_post_ra>
// kernel: tpu_custom_call.1
= control target key start
LH: loop header
LB: loop body
LE: loop exit
PB: predicated region body
PF: predicated region fallthrough
CT: control target
= control target key end

     0   :  { %v406_v1 = vmov 0.0   ;;  %vm407_vm0 = vmmov 0   ;;  %s506_s0 = inlined_call_operand.vmem [shape: f32[8,16], index: 0, kind: input, shape index: {}]   ;;  %s507_s1 = inlined_call_operand.vmem [shape: f32[16,64], index: 1, kind: input, shape index: {}]   ;;  %s508_s2 = inlined_call_operand.vmem [shape: f32[1,64], index: 2, kind: input, shape index: {}]   ;;  %s509_s3 = inlined_call_operand.vmem [shape: f32[64,32], index: 3, kind: input, shape index: {}]   ;;  %s510_s4 = inlined_call_operand.vmem [shape: f32[1,32], index: 4, kind: input, shape index: {}]   ;;  %s511_s5 = inlined_call_operand.vmem [shape: f32[32,10], index: 5, kind: input, shape index: {}]   ;;  %s512_s6 = inlined_call_operand.vmem [shape: f32[1,10], index: 6, kind: input, shape index: {}]   ;;  %s513_s7 = inlined_call_operand.hbm [shape: f32[8,10], index: 7, kind: output, shape index: {}]  }
   0x1   :  { %v29_v0 = vld [vmem:[%s507_s1 + $0x8] sm:$0xff]  ;;  %336 = vmatprep.subr.mxu0 %v406_v1  ;;  %v28_v2 = vld [vmem:[%s507_s1] sm:$0xff]  ;;  %340 = vmatprep.mubr.msk.f32.mxu0 %vm407_vm0, %v406_v1 }
   0x2   :  { %12 = vsyncpa [#allocation3], 0  ;;  %337 = vmatpush3.msra.mxu0 %v29_v0  ;;  %v27_v3 = vld [vmem:[%s506_s0] sm:$0xff]  ;;  %vm37_vm1 = vcmask 130048   ;;  %343 = vmatprep.subr.mxu1 %v406_v1  ;;  %v124_v4 = vld [vmem:[%s509_s3 + $0x38] sm:$0xff]  ;;  %vm132_vm2 = vcmask 523264  }
   0x3   :  { %338 = vmatprep.subr.mxu0 %v406_v1  ;;  %359 = vmatprep.mubr.msk.f32.mxu1 %vm407_vm0, %v406_v1  ;;  %v123_v5 = vld [vmem:[%s509_s3 + $0x30] sm:$0xff]  ;;  %v122_v6 = vld [vmem:[%s509_s3 + $0x28] sm:$0xff]  ;;  %v121_v7 = vld [vmem:[%s509_s3 + $0x20] sm:$0xff]  ;;  %vm223_vm3 = vcmask 261120   ;;  %s408_s1 = smov [#allocation2]   ;;  %vm297_vm4 = vcmask 80896  }
   0x4   :  { %339 = vmatpush3.msra.mxu0 %v28_v2  ;;  %344 = vmatpush3.msra.mxu1 %v124_v4  ;;  %v120_v8 = vld [vmem:[%s509_s3 + $0x18] sm:$0xff]  ;;  %v119_v9 = vld [vmem:[%s509_s3 + $0x10] sm:$0xff]  ;;  %v118_v10 = vld [vmem:[%s509_s3 + $0x8] sm:$0xff]  ;;  %s305_s9 = sshll.u32 %s408_s1, 4  ;;  %s306_s9 = int_to_ptr.vmem [resolvable:$true] %s305_s9 }
   0x5   :  { %341 = vmatmul.mubr.msk.f32.vlgmr.msra.gmra.mxu0 %vm37_vm1, %v27_v3  ;;  %362 = vmatprep.subr.mxu0 %v406_v1  ;;  %v117_v11 = vld [vmem:[%s509_s3] sm:$0xff]  ;;  %v215_v21 = vld [vmem:[%s511_s5 + $0x18] sm:$0xff]  ;;  %v214_v22 = vld [vmem:[%s511_s5 + $0x10] sm:$0xff]  ;;  %p389_p1 = scmp.lt.s32.totalorder %s306_s9, %s306_s9 }
   0x6   :  { %370 = vmatprep.mubr.msk.f32.mxu0 %vm407_vm0, %v406_v1  ;;  %345 = vmatprep.subr.mxu1 %v406_v1  ;;  %v313_v12 = vld [vmem:[%s508_s2] ss:$0 sm:$0xff]  ;;  %v213_v23 = vld [vmem:[%s511_s5 + $0x8] sm:$0xff] }
   0x7   :  { %346 = vmatpush3.msra.mxu1 %v123_v5  ;;  %363 = vmatpush3.msra.mxu0 %v215_v21  ;;  %v212_v24 = vld [vmem:[%s511_s5] sm:$0xff] }
   0x8   :  { %347 = vmatprep.subr.mxu1 %v406_v1  ;;  %364 = vmatprep.subr.mxu0 %v406_v1  ;;  %v315_v25 = vld [vmem:[%s510_s4] ss:$0 sm:$0xff]  ;;  %s384_s4 = scalar_lea.vmem %s306_s9, 128 }
   0x9   :  { %348 = vmatpush3.msra.mxu1 %v122_v6  ;;  %365 = vmatpush3.msra.mxu0 %v214_v22  ;;  %v317_v34 = vld [vmem:[%s512_s6] ss:$0 sm:$0xff]  ;;  %p385_p0 = scmp.ne.s32.totalorder %s306_s9, %s384_s4  ;;  %p390_p2 = scmp.lt.s32.totalorder %s384_s4, %s384_s4 }
   0xa   :  { %349 = vmatprep.subr.mxu1 %v406_v1  ;;  %366 = vmatprep.subr.mxu0 %v406_v1 }
   0xb   :  { %350 = vmatpush3.msra.mxu1 %v121_v7  ;;  %367 = vmatpush3.msra.mxu0 %v213_v23  ;;  %p391_p3 = por %p390_p2, %p389_p1 }
   0xc   :  { %351 = vmatprep.subr.mxu1 %v406_v1  ;;  %368 = vmatprep.subr.mxu0 %v406_v1 }
   0xd   :  { %352 = vmatpush3.msra.mxu1 %v120_v8  ;;  %369 = vmatpush3.msra.mxu0 %v212_v24  ;;  %p392_p4 = pnand %p391_p3, %p385_p0 }
   0xe   :  { %353 = vmatprep.subr.mxu1 %v406_v1 }
   0xf   :  { %354 = vmatpush3.msra.mxu1 %v119_v9 }
  0x10   :  { %355 = vmatprep.subr.mxu1 %v406_v1 }
  0x11   :  { %356 = vmatpush3.msra.mxu1 %v118_v10 }
  0x12   :  { %357 = vmatprep.subr.mxu1 %v406_v1 }
  0x13   :  { %358 = vmatpush3.msra.mxu1 %v117_v11 }
  0xc5   :  { %v107_v13 = vpop.f32.mrf.mxu0 }
  0xc6   :  { %v108_v14 = vadd.f32 %v313_v12, %v107_v13 }
  0xc7   :  { %v342_v15 = vpop.f32.mrf.mxu0 }
  0xc8   :  { %v111_v16 = vsub.f32 0.0, %v108_v14 }
  0xca   :  { %v112_v17 = vmul.f32 1.442695, %v111_v16 }
  0xcc   :  { %376 = vpow2.f32 %v112_v17 }
  0xd9   :  { %v377_v18 = vpop.eup %376 }
  0xda   :  { %v114_v19 = vadd.f32 1.0, %v377_v18 }
  0xdc   :  { %378 = vrcp.f32 %v114_v19 }
  0xe9   :  { %v379_v20 = vpop.eup %378 }
  0xea   :  { %360 = vmatmul.mubr.msk.f32.vlgmr.msra.gmra.mxu1 %vm132_vm2, %v379_v20 }
 0x1aa   :  { %v202_v26 = vpop.f32.mrf.mxu1 }
 0x1ab   :  { %v203_v27 = vadd.f32 %v315_v25, %v202_v26 }
 0x1ac   :  { %v361_v28 = vpop.f32.mrf.mxu1 }
 0x1ad   :  { %v206_v29 = vsub.f32 0.0, %v203_v27 }
 0x1af   :  { %v207_v30 = vmul.f32 1.442695, %v206_v29 }
 0x1b1   :  { %380 = vpow2.f32 %v207_v30 }
 0x1be   :  { %v381_v31 = vpop.eup %380 }
 0x1bf   :  { %v209_v32 = vadd.f32 1.0, %v381_v31 }
 0x1c1   :  { %382 = vrcp.f32 %v209_v32 }
 0x1ce   :  { %v383_v33 = vpop.eup %382 }
 0x1cf   :  { %371 = vmatmul.mubr.msk.f32.vlgmr.msra.gmra.mxu0 %vm223_vm3, %v383_v33 }
 0x28f   :  { %v293_v35 = vpop.f32.mrf.mxu0 }
 0x290   :  { %v294_v36 = vadd.f32 %v317_v34, %v293_v35 }
 0x291   :  { %v372_v37 = vpop.f32.mrf.mxu0 }
 0x292   :  { %298 = vst.msk [vmem:[#allocation2] sm:$0xff] %vm297_vm4, %v294_v36 }
 0x293   :  { %395 = shalt.err (!%p392_p4)
}
 0x294   :  { %308 = dma.vmem_to_hbm [thread:$0]  %s306_s9, 128, %s513_s7, [#allocation3]  }
 0x295   :  { %404 = dma.done.wait [#allocation3], 128  }
 0x296   :  { %405 = vsyncadd [#allocation3], 4294967168 }
 0x297   :  { %312 = vsyncpa [#allocation3], 1 }

</bundles_post_ra>
